<compile_context>
chip_gen: v7x
topology: tpu7x:2x2x1
jax: 0.10.0
libtpu: 0.0.40
codegen_flags: <defaults>
</compile_context>

<pallas_src>
import jax
import jax.numpy as jnp
from jax.experimental import pallas as pl
from jax.experimental.pallas import tpu as pltpu

NUM_STATE = 3   # Pendulum-v1 observation_space.shape[0]
H1 = 64
H2 = 8
OUT = 1
NEG_SLOPE = 0.01            # F.leaky_relu default
PALLAS_MIN_BATCH = 1024     # below this, plain XLA fusion wins


def _leaky_relu(x):
    return jnp.where(x >= 0, x, NEG_SLOPE * x)


def _round_up(n, m):
    return pl.cdiv(n, m) * m


def critic_kernel(x_ref, w1_ref, b1_ref, w2_ref, b2_ref, w3_ref, b3_ref, o_ref):
    # x_ref: (NUM_STATE, TB)   batch on the lane axis
    # w1: (64, 3)  b1: (64, 1)
    # w2: (8, 64)  b2: (8, 1)
    # w3: (8, 1)   b3: (1, 1)
    # o_ref: (1, TB)           lane-dense output tile
    x = x_ref[...]                                   # (3, TB)
    w1 = w1_ref[...]                                 # (64, 3)
    b1 = b1_ref[...]                                 # (64, 1)

    # ---- Layer 1: K = 3 -> unrolled VPU broadcast-FMAs (no MXU). ----
    h1 = b1                                          # broadcasts to (64, TB)
    for k in range(NUM_STATE):
        h1 = h1 + w1[:, k:k + 1] * x[k:k + 1, :]     # (64,1) * (1,TB) -> (64,TB)
    h1 = _leaky_relu(h1)                             # (64, TB)

    # ---- Layer 2: K = 64 -> MXU matmul, f32 accumulation, full precision. ----
    h2 = jnp.dot(
        w2_ref[...], h1,
        preferred_element_type=jnp.float32,
        precision=jax.lax.Precision.HIGHEST,
    ) + b2_ref[...]                                  # (8, TB)
    h2 = _leaky_relu(h2)

    # ---- Layer 3: K = 8 -> VPU multiply + sublane reduce (XLU). ----
    v = jnp.sum(w3_ref[...] * h2, axis=0, keepdims=True) + b3_ref[...]   # (1, TB)
    o_ref[...] = v


def critic_forward_pallas(x, params, *, batch_tile=1024):
    """x: (B, NUM_STATE) f32 -> value: (B, 1) f32 via the fused Pallas kernel."""
    w1, b1, w2, b2, w3, b3 = params
    B = x.shape[0]

    bt = int(max(128, min(batch_tile, _round_up(B, 128))))
    bt = int(_round_up(bt, 128))
    Bp = int(_round_up(B, bt))

    x_t = x.T                                        # (NUM_STATE, B): batch -> lanes
    if Bp != B:
        x_t = jnp.pad(x_t, ((0, 0), (0, Bp - B)))

    const_spec = lambda arr: pl.BlockSpec(arr.shape, lambda i: (0, 0))

    out = pl.pallas_call(
        critic_kernel,
        out_shape=jax.ShapeDtypeStruct((OUT, Bp), jnp.float32),
        grid=(Bp // bt,),
        in_specs=[
            pl.BlockSpec((NUM_STATE, bt), lambda i: (0, i)),
            const_spec(w1), const_spec(b1),
            const_spec(w2), const_spec(b2),
            const_spec(w3), const_spec(b3),
        ],
        out_specs=pl.BlockSpec((OUT, bt), lambda i: (0, i)),
        compiler_params=pltpu.CompilerParams(
            dimension_semantics=("parallel",),
        ),
    )(x_t, w1, b1, w2, b2, w3, b3)

    return out[:, :B].T                              # (B, 1)


def critic_reference(x, params):
    """Pure-jnp reference (identical math to the PyTorch module)."""
    w1, b1, w2, b2, w3, b3 = params                  # PyTorch (out,in) weights, column biases
    h1 = _leaky_relu(x @ w1.T + b1.T)                # (B, 64)
    h2 = _leaky_relu(h1 @ w2.T + b2.T)               # (B, 8)
    return h2 @ w3 + b3.T                            # (B, 1); w3 stored as (8, 1)


def critic_forward(x, params):
    """Dispatcher: tiny batches are pure launch overhead for Pallas -> use XLA."""
    if x.shape[0] < PALLAS_MIN_BATCH:
        return critic_reference(x, params)
    return critic_forward_pallas(x, params)


def init_params(key):
    """Deterministic synthetic init (PyTorch-Linear-style uniform bounds)."""
    ks = jax.random.split(key, 6)

    def lin(kw, kb, fan_in, fan_out):
        bound = 1.0 / jnp.sqrt(fan_in)
        w = jax.random.uniform(kw, (fan_out, fan_in), jnp.float32, -bound, bound)
        b = jax.random.uniform(kb, (fan_out, 1), jnp.float32, -bound, bound)
        return w, b

    w1, b1 = lin(ks[0], ks[1], NUM_STATE, H1)        # (64, 3), (64, 1)
    w2, b2 = lin(ks[2], ks[3], H1, H2)               # (8, 64), (8, 1)
    w3r, b3 = lin(ks[4], ks[5], H2, OUT)             # (1, 8),  (1, 1)
    w3 = w3r.T                                       # store as (8, 1) for the kernel reduce
    return (w1, b1, w2, b2, w3, b3)


if __name__ == "__main__":
    key = jax.random.PRNGKey(0)
    k_param, k_x = jax.random.split(key)
    params = init_params(k_param)

    # Small demo shape; batch_tile=128 gives a 4-step "parallel" grid.
    B = 512
    x = jax.random.normal(k_x, (B, NUM_STATE), jnp.float32)

    value = critic_forward_pallas(x, params, batch_tile=128)
    jax.block_until_ready(value)

    ref = critic_reference(x, params)
    assert value.shape == (B, OUT)
    assert jnp.allclose(value, ref, atol=1e-4, rtol=1e-4), float(
        jnp.max(jnp.abs(value - ref)))

    # Padding path: batch not a multiple of the tile.
    v_pad = critic_forward_pallas(x[:300], params, batch_tile=128)
    jax.block_until_ready(v_pad)
    assert v_pad.shape == (300, OUT)
    assert jnp.allclose(v_pad, ref[:300], atol=1e-4, rtol=1e-4)

    # Dispatcher: tiny batch falls back to plain XLA (no Pallas launch overhead).
    v_small = critic_forward(x[:8], params)
    jax.block_until_ready(v_small)
    assert v_small.shape == (8, OUT)
    assert jnp.allclose(v_small, ref[:8], atol=1e-4, rtol=1e-4)

    print("KERNEL_OK")
</pallas_src>

<mosaic_0001>
module attributes {stable_mosaic.version = 11 : i64} {
  func.func @critic_kernel(%arg0: i32, %arg1: memref<3x128xf32, #tpu.memory_space<vmem>>, %arg2: memref<64x3xf32, #tpu.memory_space<vmem>>, %arg3: memref<64x1xf32, #tpu.memory_space<vmem>>, %arg4: memref<8x64xf32, #tpu.memory_space<vmem>>, %arg5: memref<8x1xf32, #tpu.memory_space<vmem>>, %arg6: memref<8x1xf32, #tpu.memory_space<vmem>>, %arg7: memref<1x1xf32, #tpu.memory_space<vmem>>, %arg8: memref<1x128xf32, #tpu.memory_space<vmem>>) attributes {dimension_semantics = [#tpu.dimension_semantics<parallel>], iteration_bounds = array<i64: 4>, scalar_prefetch = 0 : i64, scratch_operands = 0 : i64, tpu.core_type = #tpu.core_type<tc>, window_params = [{transform_indices = @transform_0, window_bounds = array<i64: 3, 128>}, {pipeline_mode = #tpu.pipeline_mode<synchronous>, transform_indices = @transform_1, window_bounds = array<i64: 64, 3>}, {pipeline_mode = #tpu.pipeline_mode<synchronous>, transform_indices = @transform_2, window_bounds = array<i64: 64, 1>}, {pipeline_mode = #tpu.pipeline_mode<synchronous>, transform_indices = @transform_3, window_bounds = array<i64: 8, 64>}, {pipeline_mode = #tpu.pipeline_mode<synchronous>, transform_indices = @transform_4, window_bounds = array<i64: 8, 1>}, {pipeline_mode = #tpu.pipeline_mode<synchronous>, transform_indices = @transform_5, window_bounds = array<i64: 8, 1>}, {pipeline_mode = #tpu.pipeline_mode<synchronous>, transform_indices = @transform_6, window_bounds = array<i64: 1, 1>}, {transform_indices = @transform_7, window_bounds = array<i64: 1, 128>}]} {
    %c0 = arith.constant 0 : index
    %c0_0 = arith.constant 0 : index
    %0 = vector.load %arg1[%c0, %c0_0] : memref<3x128xf32, #tpu.memory_space<vmem>>, vector<3x128xf32>
    %c0_1 = arith.constant 0 : index
    %c0_2 = arith.constant 0 : index
    %1 = vector.load %arg2[%c0_1, %c0_2] : memref<64x3xf32, #tpu.memory_space<vmem>>, vector<64x3xf32>
    %c0_3 = arith.constant 0 : index
    %c0_4 = arith.constant 0 : index
    %2 = vector.load %arg3[%c0_3, %c0_4] : memref<64x1xf32, #tpu.memory_space<vmem>>, vector<64x1xf32>
    %3 = vector.extract_strided_slice %1 {offsets = [0, 0], sizes = [64, 1], strides = [1, 1]} : vector<64x3xf32> to vector<64x1xf32>
    %4 = vector.extract_strided_slice %0 {offsets = [0, 0], sizes = [1, 128], strides = [1, 1]} : vector<3x128xf32> to vector<1x128xf32>
    %5 = vector.broadcast %3 : vector<64x1xf32> to vector<64x128xf32>
    %6 = vector.broadcast %4 : vector<1x128xf32> to vector<64x128xf32>
    %7 = arith.mulf %5, %6 : vector<64x128xf32>
    %8 = vector.broadcast %2 : vector<64x1xf32> to vector<64x128xf32>
    %9 = arith.addf %8, %7 : vector<64x128xf32>
    %10 = vector.extract_strided_slice %1 {offsets = [0, 1], sizes = [64, 1], strides = [1, 1]} : vector<64x3xf32> to vector<64x1xf32>
    %11 = vector.extract_strided_slice %0 {offsets = [1, 0], sizes = [1, 128], strides = [1, 1]} : vector<3x128xf32> to vector<1x128xf32>
    %12 = vector.broadcast %10 : vector<64x1xf32> to vector<64x128xf32>
    %13 = vector.broadcast %11 : vector<1x128xf32> to vector<64x128xf32>
    %14 = arith.mulf %12, %13 : vector<64x128xf32>
    %15 = arith.addf %9, %14 : vector<64x128xf32>
    %16 = vector.extract_strided_slice %1 {offsets = [0, 2], sizes = [64, 1], strides = [1, 1]} : vector<64x3xf32> to vector<64x1xf32>
    %17 = vector.extract_strided_slice %0 {offsets = [2, 0], sizes = [1, 128], strides = [1, 1]} : vector<3x128xf32> to vector<1x128xf32>
    %18 = vector.broadcast %16 : vector<64x1xf32> to vector<64x128xf32>
    %19 = vector.broadcast %17 : vector<1x128xf32> to vector<64x128xf32>
    %20 = arith.mulf %18, %19 : vector<64x128xf32>
    %21 = arith.addf %15, %20 : vector<64x128xf32>
    %cst = arith.constant 0.000000e+00 : f32
    %22 = vector.broadcast %cst : f32 to vector<64x128xf32>
    %23 = arith.cmpf oge, %21, %22 : vector<64x128xf32>
    %cst_5 = arith.constant 0.00999999977 : f32
    %24 = vector.broadcast %cst_5 : f32 to vector<64x128xf32>
    %25 = arith.mulf %24, %21 : vector<64x128xf32>
    %26 = arith.select %23, %21, %25 : vector<64x128xi1>, vector<64x128xf32>
    %c0_6 = arith.constant 0 : index
    %c0_7 = arith.constant 0 : index
    %27 = vector.load %arg4[%c0_6, %c0_7] : memref<8x64xf32, #tpu.memory_space<vmem>>, vector<8x64xf32>
    %cst_8 = arith.constant dense<0.000000e+00> : vector<8x128xf32>
    %28 = tpu.matmul %27, %26, %cst_8 {dimension_numbers = #tpu.dot_dimension_numbers<[1], [0], [0], [1], [0, 0, 1, 1], [], []>, precision = #tpu.contract_precision<fp32>} : vector<8x64xf32>, vector<64x128xf32>, vector<8x128xf32> -> vector<8x128xf32>
    %c0_9 = arith.constant 0 : index
    %c0_10 = arith.constant 0 : index
    %29 = vector.load %arg5[%c0_9, %c0_10] : memref<8x1xf32, #tpu.memory_space<vmem>>, vector<8x1xf32>
    %30 = vector.broadcast %29 : vector<8x1xf32> to vector<8x128xf32>
    %31 = arith.addf %28, %30 : vector<8x128xf32>
    %cst_11 = arith.constant 0.000000e+00 : f32
    %32 = vector.broadcast %cst_11 : f32 to vector<8x128xf32>
    %33 = arith.cmpf oge, %31, %32 : vector<8x128xf32>
    %cst_12 = arith.constant 0.00999999977 : f32
    %34 = vector.broadcast %cst_12 : f32 to vector<8x128xf32>
    %35 = arith.mulf %34, %31 : vector<8x128xf32>
    %36 = arith.select %33, %31, %35 : vector<8x128xi1>, vector<8x128xf32>
    %c0_13 = arith.constant 0 : index
    %c0_14 = arith.constant 0 : index
    %37 = vector.load %arg6[%c0_13, %c0_14] : memref<8x1xf32, #tpu.memory_space<vmem>>, vector<8x1xf32>
    %38 = vector.broadcast %37 : vector<8x1xf32> to vector<8x128xf32>
    %39 = arith.mulf %38, %36 : vector<8x128xf32>
    %cst_15 = arith.constant dense<0.000000e+00> : vector<128xf32>
    %40 = vector.multi_reduction <add>, %39, %cst_15 [0] : vector<8x128xf32> to vector<128xf32>
    %41 = vector.shape_cast %40 : vector<128xf32> to vector<1x128xf32>
    %c0_16 = arith.constant 0 : index
    %c0_17 = arith.constant 0 : index
    %42 = vector.load %arg7[%c0_16, %c0_17] : memref<1x1xf32, #tpu.memory_space<vmem>>, vector<1x1xf32>
    %43 = vector.broadcast %42 : vector<1x1xf32> to vector<1x128xf32>
    %44 = arith.addf %41, %43 : vector<1x128xf32>
    %c0_18 = arith.constant 0 : index
    %c0_19 = arith.constant 0 : index
    %45 = vector.load %arg8[%c0_18, %c0_19] : memref<1x128xf32, #tpu.memory_space<vmem>>, vector<1x128xf32>
    tpu.vector_store %arg8[%c0_18, %c0_19], %44 {strides = array<i32>} : memref<1x128xf32, #tpu.memory_space<vmem>>, vector<1x128xf32>,
    return
  }
  func.func @transform_0(%arg0: i32) -> (i32, i32) {
    %c0_i32 = arith.constant 0 : i32
    %c0_i32_0 = arith.constant 0 : i32
    return %c0_i32, %arg0 : i32, i32
  }
  func.func @transform_1(%arg0: i32) -> (i32, i32) {
    %c0_i32 = arith.constant 0 : i32
    %c0_i32_0 = arith.constant 0 : i32
    %c0_i32_1 = arith.constant 0 : i32
    return %c0_i32, %c0_i32_0 : i32, i32
  }
  func.func @transform_2(%arg0: i32) -> (i32, i32) {
    %c0_i32 = arith.constant 0 : i32
    %c0_i32_0 = arith.constant 0 : i32
    %c0_i32_1 = arith.constant 0 : i32
    return %c0_i32, %c0_i32_0 : i32, i32
  }
  func.func @transform_3(%arg0: i32) -> (i32, i32) {
    %c0_i32 = arith.constant 0 : i32
    %c0_i32_0 = arith.constant 0 : i32
    %c0_i32_1 = arith.constant 0 : i32
    return %c0_i32, %c0_i32_0 : i32, i32
  }
  func.func @transform_4(%arg0: i32) -> (i32, i32) {
    %c0_i32 = arith.constant 0 : i32
    %c0_i32_0 = arith.constant 0 : i32
    %c0_i32_1 = arith.constant 0 : i32
    return %c0_i32, %c0_i32_0 : i32, i32
  }
  func.func @transform_5(%arg0: i32) -> (i32, i32) {
    %c0_i32 = arith.constant 0 : i32
    %c0_i32_0 = arith.constant 0 : i32
    %c0_i32_1 = arith.constant 0 : i32
    return %c0_i32, %c0_i32_0 : i32, i32
  }
  func.func @transform_6(%arg0: i32) -> (i32, i32) {
    %c0_i32 = arith.constant 0 : i32
    %c0_i32_0 = arith.constant 0 : i32
    %c0_i32_1 = arith.constant 0 : i32
    return %c0_i32, %c0_i32_0 : i32, i32
  }
  func.func @transform_7(%arg0: i32) -> (i32, i32) {
    %c0_i32 = arith.constant 0 : i32
    %c0_i32_0 = arith.constant 0 : i32
    return %c0_i32, %arg0 : i32, i32
  }
}

</mosaic_0001>

<bundles_post_ra>
// kernel: tpu_custom_call.1
= control target key start
LH: loop header
LB: loop body
LE: loop exit
PB: predicated region body
PF: predicated region fallthrough
CT: control target
= control target key end

     0   :  { %s1950_s0 = inlined_call_operand.vmem [shape: f32[3,512], index: 0, kind: input, shape index: {}]   ;;  %s1951_s1 = inlined_call_operand.vmem [shape: f32[64,3], index: 1, kind: input, shape index: {}]   ;;  %s1952_s2 = inlined_call_operand.vmem [shape: f32[64,1], index: 2, kind: input, shape index: {}]   ;;  %s1953_s3 = inlined_call_operand.vmem [shape: f32[8,64], index: 3, kind: input, shape index: {}]   ;;  %s1954_s4 = inlined_call_operand.vmem [shape: f32[8,1], index: 4, kind: input, shape index: {}]   ;;  %s1955_s5 = inlined_call_operand.vmem [shape: f32[8,1], index: 5, kind: input, shape index: {}]   ;;  %s1956_s6 = inlined_call_operand.<no memory space> [shape: f32[1,1], index: 6, kind: input, shape index: {}]   ;;  %s1957_s7 = inlined_call_operand.hbm [shape: f32[1,512], index: 7, kind: output, shape index: {}]  }
   0x1   :  { %v12_v0 = vstv %s1956_s6 }
   0x2   :  { %13 = vst [vmem:[#allocation2] sm:$0x1] %v12_v0 }
   0x3   :  { %14 = vsyncpa [#allocation4], 0 }
   0x4   :  { %16 = vsyncpa [#allocation4 + $0x1], 0  ;;  %s1601_s26 = smov 0   ;;  %s1603_s27 = smov 0  }
   0x5   :  { %s1605_s28 = smov 0   ;;  %s1607_s29 = smov 0  }
   0x6 LB: > { %s1622_s6 = sadd.s32 4294967295, %s1549_s29   ;;  %s1164_s30 = sadd.s32 4294967294, %s1549_s29   ;;  %s1549_s29 = sphi %s1607_s29, %s1963_s29   ;;  %s1545_s28 = sphi %s1605_s28, %s1962_s28   ;;  %s1541_s27 = sphi %s1603_s27, %s1961_s27   ;;  %s1537_s26 = sphi %s1601_s26, %s1960_s26  }
   0x7   : > { %s1626_s8 = sadd.s32 1, %s1549_s29   ;;  %s181_s9 = sadd.s32 1, %s1545_s28 }
   0x8   : > { %s178_s10 = ssub.s32 %s1549_s29, %s1626_s8  ;;  %p191_p0 = scmp.ne.s32.totalorder %s1545_s28, %s1541_s27 }
   0x9   : > { %p179_p1 = scmp.eq.s32.totalorder %s178_s10, 0  ;;  %p192_p2 = scmp.eq.s32.totalorder %s1622_s6, 3 }
   0xa   : > { %p197_p3 = scmp.ne.s32.totalorder %s1541_s27, %s1537_s26  ;;  %p198_p4 = scmp.eq.s32.totalorder %s1164_s30, 3 }
   0xb   : > { %s1637_s11 = scalar_select %p179_p1, %s1545_s28, %s181_s9  }
   0xc   : > { %p1639_p5 = por %p192_p2, %p191_p0  ;;  %p1643_p6 = por %p198_p4, %p197_p3 }
   0xd   : > { %p1167_p7 = scmp.ge.s32.totalorder %s1549_s29, 1  ;;  %p241_p8 = scmp.lt.s32.totalorder %s1549_s29, 5 }
   0xf   : > { %p242_p9 = pnand %p1167_p7, %p241_p8 }
  0x10   : > { %v284_v1 = vld [vmem:[%s1952_s2] sm:$0xff] (!%p242_p9)  ;;  %v1551_v3 = vmov (!%p242_p9), 0   ;;  %v285_v4 = vld [vmem:[%s1952_s2 + $0x8] sm:$0xff] (!%p242_p9)  ;;  %v279_v6 = vld [vmem:[%s1951_s1 + $0x18] sm:$0xff] (!%p242_p9)  ;;  %v1552_v7 = vmov (!%p242_p9), 1   ;;  %v1553_v12 = vmov (!%p242_p9), 2   ;;  %v332_v31 = vlaneseq (!%p242_p9) }
  0x11   : > { %245 = sbr.rel (%p242_p9) target bundleno = 527 (0x20f), region = 48  ;;  %v276_v2 = vld [vmem:[%s1951_s1] sm:$0xff] (!%p242_p9)  ;;  %1468 = vset.pattern.permute.xlu1 (!%p242_p9), %v1551_v3  ;;  %1467 = vset.pattern.permute.xlu0 (!%p242_p9), %v1551_v3  ;;  %v277_v5 = vld [vmem:[%s1951_s1 + $0x8] sm:$0xff] (!%p242_p9)  ;;  %v286_v8 = vld [vmem:[%s1952_s2 + $0x10] sm:$0xff] (!%p242_p9)  ;;  %v1554_v18 = vmov (!%p242_p9), 0.0|0.0   ;;  %vm1555_vm0 = vmmov (!%p242_p9), 0  }
  0x12   : > { %346 = vperm.xlu1 (!%p242_p9), %1468, %v284_v1   ;;  %294 = vperm.xlu0 (!%p242_p9), %1467, %v276_v2   ;;  %v278_v9 = vld [vmem:[%s1951_s1 + $0x10] sm:$0xff] (!%p242_p9)  ;;  %v281_v10 = vld [vmem:[%s1951_s1 + $0x28] sm:$0xff] (!%p242_p9)  ;;  %v288_v11 = vld [vmem:[%s1952_s2 + $0x20] sm:$0xff] (!%p242_p9)  ;;  %v1556_v21 = vmov (!%p242_p9), 0.0   ;;  %p271_p10 = scmp.lt.s32.totalorder (!%p242_p9), %s1622_s6, 3  ;;  %v1721_v33 = vshrl.u32 (!%p242_p9), %v332_v31, 7 }
  0x13   : > { %v283_v13 = vld [vmem:[%s1951_s1 + $0x38] sm:$0xff] (!%p242_p9)  ;;  %v290_v15 = vld [vmem:[%s1952_s2 + $0x30] sm:$0xff] (!%p242_p9)  ;;  %v280_v16 = vld [vmem:[%s1951_s1 + $0x20] sm:$0xff] (!%p242_p9)  ;;  %1340 = vmatprep.subr.bf16.mxu1 (!%p242_p9), %v1554_v18  ;;  %1376 = vmatprep.subr.bf16.mxu0 (!%p242_p9), %v1554_v18  ;;  %vm527_vm6 = vcmask (!%p242_p9), 523264   ;;  %s269_s9 = sand.u32 (!%p242_p9), 1, %s1541_s27   ;;  %s1169_s10 = sshll.u32 (!%p242_p9), %s1622_s6, 4 }
  0x14   : > { %v287_v14 = vld [vmem:[%s1952_s2 + $0x18] sm:$0xff] (!%p242_p9)  ;;  %v282_v17 = vld [vmem:[%s1951_s1 + $0x30] sm:$0xff] (!%p242_p9)  ;;  %v289_v19 = vld [vmem:[%s1952_s2 + $0x28] sm:$0xff] (!%p242_p9)  ;;  %1242 = vmatprep.mubr.msk.f32.mxu1 (!%p242_p9), %vm1555_vm0, %v1556_v21  ;;  %1299 = vmatprep.mubr.msk.f32.mxu0 (!%p242_p9), %vm1555_vm0, %v1556_v21  ;;  %v334_v36 = vsub.s32 (!%p242_p9), 0, %v1721_v33  ;;  %v426_v37 = vsub.s32 (!%p242_p9), 1, %v1721_v33  ;;  %v478_v43 = vsub.s32 (!%p242_p9), 2, %v1721_v33  ;;  %s1908_s18 = scalar_lea.hbm (!%p242_p9), %s1957_s7, %s1169_s10 }
  0x15   : > { %v291_v20 = vld [vmem:[%s1952_s2 + $0x38] sm:$0xff] (!%p242_p9)  ;;  %v521_v26 = vld [vmem:[%s1954_s4] sm:$0xff] (!%p242_p9)  ;;  %s270_s14 = scalar_lea.vmem (!%p242_p9), [#allocation3], %s269_s9  ;;  %s1097_s19 = scalar_lea.sflag (!%p242_p9), [#allocation4], %s269_s9 }
  0x16   : > { %351 = vperm.xlu1 (!%p242_p9), %1468, %v285_v4   ;;  %299 = vperm.xlu0 (!%p242_p9), %1467, %v277_v5   ;;  %v1084_v27 = vld [vmem:[#allocation2] sm:$0x1] (!%p242_p9)  ;;  %s1109_s15 = sshll.u32 (!%p242_p9), %s270_s14, 4  ;;  %s1910_s15 = int_to_ptr.vmem [resolvable:$true] %s1109_s15 }
  0x17   : > { %v1071_v28 = vld [vmem:[%s1955_s5] sm:$0xff] (!%p242_p9) }
  0x18   : > { %s272_s20 = scalar_select %p271_p10, %s1622_s6, 3 }
  0x19   : > { %s1557_s6 = smov [#allocation3]  }
  0x1a   : > { %1469 = vset.pattern.permute.xlu1 %v1552_v7  ;;  %309 = vperm.xlu0 %1467, %v279_v6   ;;  %s1168_s21 = sshll.u32 %s272_s20, 2  ;;  %s1487_s20 = scalar_lea.vmem %s1910_s15, 16 }
  0x1b   : > { %397 = vperm.xlu1 %1469, %v277_v5   ;;  %s274_s24 = scalar_lea.vmem %s1950_s0, %s1168_s21  ;;  %p1488_p11 = scmp.ne.s32.totalorder %s1910_s15, %s1487_s20 }
  0x1c   : > { %v275_v38 = vld [vmem:[%s274_s24] sm:$0x7]  ;;  %s1491_s21 = sshll.u32 %s1557_s6, 4  ;;  %s1492_s21 = int_to_ptr.vmem [resolvable:$false] %s1491_s21 }
  0x1d   : > { %v1734_v41 = vrot.slane %v275_v38, %v334_v36  ;;  %v1736_v42 = vrot.slane %v275_v38, %v426_v37  ;;  %v1743_v48 = vrot.slane %v275_v38, %v478_v43  ;;  %p1489_p12 = pnand %p1488_p11, %p1639_p5  ;;  %s1493_s22 = scalar_lea.vmem %s1492_s21, 32 }
  0x1e   : > { %356 = vperm.xlu0 %1467, %v286_v8   ;;  %p1494_p0 = scmp.lt.s32.totalorder %s1910_s15, %s1492_s21  ;;  %p1495_p1 = scmp.lt.s32.totalorder %s1493_s22, %s1487_s20 }
  0x1f   : > { %1470 = vset.pattern.permute.xlu1 %v1551_v3  ;;  %p1490_p13 = pneg %p1489_p12 }
  0x20   : > { %304 = vperm.xlu1 %1470, %v278_v9   ;;  %p1496_p2 = por %p1495_p1, %p1494_p0 }
  0x22   : > { %319 = vperm.xlu0 %1467, %v281_v10   ;;  %p1497_p3 = pnand %p1496_p2, %p1490_p13 }
  0x24   : > { %1471 = vset.pattern.permute.xlu1 %v1553_v12 }
  0x25   : > { %445 = vperm.xlu1 %1471, %v276_v2  }
  0x26   : > { %366 = vperm.xlu0 %1467, %v288_v11  }
  0x29   : > { %449 = vperm.xlu1 %1471, %v277_v5  }
  0x2a   : > { %329 = vperm.xlu0 %1467, %v283_v13  }
  0x2d   : > { %1472 = vset.pattern.permute.xlu1 %v1551_v3 }
  0x2e   : > { %361 = vperm.xlu1 %1472, %v287_v14   ;;  %376 = vperm.xlu0 %1467, %v290_v15  }
  0x32   : > { %1473 = vset.pattern.permute.xlu1 %v1552_v7  ;;  %1480 = vset.pattern.permute.xlu0 %v1552_v7 }
  0x33   : > { %405 = vperm.xlu1 %1473, %v279_v6   ;;  %393 = vperm.xlu0 %1480, %v276_v2  }
  0x37   : > { %1474 = vset.pattern.permute.xlu1 %v1551_v3  ;;  %401 = vperm.xlu0 %1480, %v278_v9  }
  0x38   : > { %314 = vperm.xlu1 %1474, %v280_v16  }
  0x3b   : > { %409 = vperm.xlu0 %1480, %v280_v16  }
  0x3c   : > { %1475 = vset.pattern.permute.xlu1 %v1553_v12 }
  0x3d   : > { %453 = vperm.xlu1 %1475, %v278_v9  }
  0x3f   : > { %417 = vperm.xlu0 %1480, %v282_v17  }
  0x41   : > { %457 = vperm.xlu1 %1475, %v279_v6  }
  0x43   : > { %1484 = vset.pattern.permute.xlu0 %v1553_v12 }
  0x44   : > { %473 = vperm.xlu0 %1484, %v283_v13  }
  0x45   : > { %1476 = vset.pattern.permute.xlu1 %v1551_v3 }
  0x46   : > { %371 = vperm.xlu1 %1476, %v289_v19  }
  0x48   : > { %1486 = vset.pattern.permute.xlu0 %v1551_v3 }
  0x49   : > { %1087 = vperm.xlu0 %1486, %v1084_v27  }
  0x4a   : > { %1477 = vset.pattern.permute.xlu1 %v1552_v7 }
  0x4b   : > { %413 = vperm.xlu1 %1477, %v281_v10  }
  0x4f   : > { %1478 = vset.pattern.permute.xlu1 %v1551_v3 }
  0x50   : > { %324 = vperm.xlu1 %1478, %v282_v17  }
  0x54   : > { %1479 = vset.pattern.permute.xlu1 %v1553_v12 }
  0x55   : > { %461 = vperm.xlu1 %1479, %v280_v16  }
  0x59   : > { %465 = vperm.xlu1 %1479, %v281_v10  }
  0x5d   : > { %1481 = vset.pattern.permute.xlu1 %v1551_v3 }
  0x5e   : > { %381 = vperm.xlu1 %1481, %v291_v20  }
  0x62   : > { %1482 = vset.pattern.permute.xlu1 %v1552_v7 }
  0x63   : > { %421 = vperm.xlu1 %1482, %v283_v13  }
  0x67   : > { %1483 = vset.pattern.permute.xlu1 %v1553_v12 }
  0x68   : > { %469 = vperm.xlu1 %1483, %v282_v17  }
  0x6c   : > { %1485 = vset.pattern.permute.xlu1 %v1551_v3 }
  0x6d   : > { %524 = vperm.xlu1 %1485, %v521_v26  }
  0x71   : > { %1074 = vperm.xlu1 %1485, %v1071_v28  }
  0x91   : > { %v347_v22 = vpop.permute.xlu1 %346  ;;  %v295_v23 = vpop.permute.xlu0 %294 }
  0x92   : > { %v336_v53 = vmul.f32 %v1734_v41, %v295_v23 }
  0x94   : > { %v384_v58 = vadd.f32 %v347_v22, %v336_v53 }
  0x95   : > { %v352_v24 = vpop.permute.xlu1 %351  ;;  %v300_v25 = vpop.permute.xlu0 %299 }
  0x96   : > { %v337_v45 = vmul.f32 %v1734_v41, %v300_v25 }
  0x98   : > { %v385_v49 = vadd.f32 %v352_v24, %v337_v45 }
  0x99   : > { %v310_v29 = vpop.permute.xlu0 %309 }
  0x9a   : > { %v398_v30 = vpop.permute.xlu1 %397  ;;  %v339_v6 = vmul.f32 %v1734_v41, %v310_v29 }
  0x9b   : > { %v429_v47 = vmul.f32 %v1736_v42, %v398_v30 }
  0x9d   : > { %v357_v32 = vpop.permute.xlu0 %356  ;;  %v437_v54 = vadd.f32 %v429_v47, %v385_v49 }
  0x9f   : > { %v305_v34 = vpop.permute.xlu1 %304 }
  0xa0   : > { %v338_v0 = vmul.f32 %v1734_v41, %v305_v34 }
  0xa1   : > { %v1726_v35 = vpop.permute.xlu0 %319 }
  0xa2   : > { %v386_v7 = vadd.f32 %v357_v32, %v338_v0  ;;  %v341_v45 = vmul.f32 %v1734_v41, %v1726_v35 }
  0xa4   : > { %v446_v39 = vpop.permute.xlu1 %445 }
  0xa5   : > { %v1730_v40 = vpop.permute.xlu0 %366  ;;  %v480_v60 = vmul.f32 %v1743_v48, %v446_v39 }
  0xa8   : > { %v450_v44 = vpop.permute.xlu1 %449 }
  0xa9   : > { %v1740_v46 = vpop.permute.xlu0 %329  ;;  %v481_v50 = vmul.f32 %v1743_v48, %v450_v44 }
  0xab   : > { %v489_v55 = vadd.f32 %v481_v50, %v437_v54 }
  0xad   : > { %v362_v51 = vpop.permute.xlu1 %361  ;;  %v1746_v52 = vpop.permute.xlu0 %376  ;;  %v505_v61 = vmul.f32 0.01, %v489_v55  ;;  %vm497_vm1 = vcmp.ge.f32.partialorder %v489_v55, 0.0 }
  0xae   : > { %v387_v16 = vadd.f32 %v362_v51, %v339_v6 }
  0xaf   : > { %v1753_v5 = vsel %vm497_vm1, %v489_v55, %v505_v61 }
  0xb0   : > { %v535_v11 = vand.u32 4294901760, %v1753_v5 }
  0xb2   : > { %v406_v56 = vpop.permute.xlu1 %405  ;;  %v394_v57 = vpop.permute.xlu0 %393 }
  0xb3   : > { %v428_v59 = vmul.f32 %v1736_v42, %v394_v57  ;;  %v431_v12 = vmul.f32 %v1736_v42, %v406_v56 }
  0xb5   : > { %v436_v62 = vadd.f32 %v428_v59, %v384_v58  ;;  %v439_v20 = vadd.f32 %v431_v12, %v387_v16  ;;  %v520_v59 = vld [vmem:[%s1953_s3] sm:$0xff] }
  0xb6   : > { %v402_v63 = vpop.permute.xlu0 %401 }
  0xb7   : > { %v488_v1 = vadd.f32 %v480_v60, %v436_v62  ;;  %v315_v2 = vpop.permute.xlu1 %314  ;;  %v430_v4 = vmul.f32 %v1736_v42, %v402_v63  ;;  %v529_v63 = vsel %vm527_vm6, %v520_v59, 0 }
  0xb8   : > { %v340_v34 = vmul.f32 %v1734_v41, %v315_v2 }
  0xb9   : > { %vm496_vm2 = vcmp.ge.f32.partialorder %v488_v1, 0.0  ;;  %v504_v3 = vmul.f32 0.01, %v488_v1  ;;  %v438_v13 = vadd.f32 %v430_v4, %v386_v7  ;;  %v343_v4 = vmul.f32 %v1734_v41, %v1740_v46 }
  0xba   : > { %v410_v37 = vpop.permute.xlu0 %409  ;;  %v388_v39 = vadd.f32 %v1730_v40, %v340_v34  ;;  %v1818_v46 = vsub.f32 %v1753_v5, %v535_v11 }
  0xbb   : > { %v1756_v8 = vsel %vm496_vm2, %v488_v1, %v504_v3  ;;  %v432_v43 = vmul.f32 %v1736_v42, %v410_v37 }
  0xbc   : > { %v454_v9 = vpop.permute.xlu1 %453  ;;  %v532_v10 = vand.u32 4294901760, %v1756_v8  ;;  %v624_v5 = vand.u32 4294901760, %v1818_v46 }
  0xbd   : > { %v482_v14 = vmul.f32 %v1743_v48, %v454_v9  ;;  %v440_v47 = vadd.f32 %v432_v43, %v388_v39  ;;  %v1800_v9 = vand.u32 4294901760, %v529_v63 }
  0xbe   : > { %v1766_v15 = vpack.c.bf16 %v535_v11, %v532_v10  ;;  %v418_v58 = vpop.permute.xlu0 %417  ;;  %v1807_v16 = vsub.f32 %v1756_v8, %v532_v10  ;;  %v625_v39 = vsub.f32 %v1818_v46, %v624_v5 }
  0xbf   : > { %v490_v17 = vadd.f32 %v482_v14, %v438_v13  ;;  %v1821_v8 = vsub.f32 %v529_v63, %v1800_v9 }
  0xc0   : > { %v458_v19 = vpop.permute.xlu1 %457  ;;  %1342 = vmatpush3.bf16.msra.mxu1 %v1766_v15  ;;  %1378 = vmatpush3.bf16.msra.mxu0 %v1766_v15 }
  0xc1   : > { %v506_v22 = vmul.f32 0.01, %v490_v17  ;;  %v483_v23 = vmul.f32 %v1743_v48, %v458_v19  ;;  %1343 = vmatprep.subr.bf16.mxu1 %v1554_v18  ;;  %1379 = vmatprep.subr.bf16.mxu0 %v1554_v18  ;;  %vm498_vm3 = vcmp.ge.f32.partialorder %v490_v17, 0.0  ;;  %v434_v19 = vmul.f32 %v1736_v42, %v418_v58 }
  0xc3   : > { %v491_v24 = vadd.f32 %v483_v23, %v439_v20  ;;  %v1773_v27 = vsel %vm498_vm3, %v490_v17, %v506_v22  ;;  %v474_v1 = vpop.permute.xlu0 %473  ;;  %v617_v22 = vand.u32 4294901760, %v1807_v16 }
  0xc4   : > { %v538_v29 = vand.u32 4294901760, %v1773_v27  ;;  %v487_v14 = vmul.f32 %v1743_v48, %v474_v1 }
  0xc5   : > { %vm499_vm4 = vcmp.ge.f32.partialorder %v491_v24, 0.0  ;;  %v507_v25 = vmul.f32 0.01, %v491_v24  ;;  %v372_v26 = vpop.permute.xlu1 %371 }
  0xc6   : > { %v389_v51 = vadd.f32 %v372_v26, %v341_v45  ;;  %v606_v26 = vand.u32 4294901760, %v1821_v8  ;;  %v1832_v11 = vsub.f32 %v1773_v27, %v538_v29 }
  0xc7   : > { %v515_v28 = vsel %vm499_vm4, %v491_v24, %v507_v25 }
  0xc8   : > { %v541_v30 = vand.u32 4294901760, %v515_v28  ;;  %v631_v27 = vand.u32 4294901760, %v1832_v11 }
  0xca   : > { %v414_v31 = vpop.permute.xlu1 %413  ;;  %v1778_v32 = vpack.c.bf16 %v541_v30, %v538_v29  ;;  %v1825_v23 = vsub.f32 %v515_v28, %v541_v30 }
  0xcb   : > { %v433_v49 = vmul.f32 %v1736_v42, %v414_v31 }
  0xcc   : > { %1345 = vmatpush3.bf16.msra.mxu1 %v1778_v32  ;;  %1381 = vmatpush3.bf16.msra.mxu0 %v1778_v32  ;;  %v638_v28 = vand.u32 4294901760, %v1825_v23 }
  0xcd   : > { %1346 = vmatprep.subr.bf16.mxu1 %v1554_v18  ;;  %1382 = vmatprep.subr.bf16.mxu0 %v1554_v18  ;;  %v441_v55 = vadd.f32 %v433_v49, %v389_v51 }
  0xce   : > { %v1392_v1 = vpack.c.bf16 %v638_v28, %v631_v27 }
  0xcf   : > { %v325_v38 = vpop.permute.xlu1 %324 }
  0xd0   : > { %v342_v0 = vmul.f32 %v1734_v41, %v325_v38  ;;  %v607_v38 = vsub.f32 %v1821_v8, %v606_v26 }
  0xd2   : > { %v390_v17 = vadd.f32 %v1746_v52, %v342_v0 }
  0xd4   : > { %v462_v44 = vpop.permute.xlu1 %461 }
  0xd5   : > { %v484_v50 = vmul.f32 %v1743_v48, %v462_v44 }
  0xd7   : > { %v492_v53 = vadd.f32 %v484_v50, %v440_v47  ;;  %v639_v50 = vsub.f32 %v1825_v23, %v638_v28 }
  0xd8   : > { %v466_v54 = vpop.permute.xlu1 %465 }
  0xd9   : > { %v508_v56 = vmul.f32 0.01, %v492_v53  ;;  %v485_v57 = vmul.f32 %v1743_v48, %v466_v54  ;;  %vm500_vm5 = vcmp.ge.f32.partialorder %v492_v53, 0.0  ;;  %v640_v59 = vand.u32 4294901760, %v639_v50 }
  0xdb   : > { %v493_v40 = vadd.f32 %v485_v57, %v441_v55  ;;  %v516_v61 = vsel %vm500_vm5, %v492_v53, %v508_v56  ;;  %v608_v53 = vand.u32 4294901760, %v607_v38  ;;  %v626_v55 = vand.u32 4294901760, %v625_v39 }
  0xdc   : > { %v544_v2 = vand.u32 4294901760, %v516_v61  ;;  %v632_v56 = vsub.f32 %v1832_v11, %v631_v27 }
  0xdd   : > { %vm501_vm7 = vcmp.ge.f32.partialorder %v493_v40, 0.0  ;;  %v509_v35 = vmul.f32 0.01, %v493_v40  ;;  %v382_v60 = vpop.permute.xlu1 %381 }
  0xde   : > { %v391_v12 = vadd.f32 %v382_v60, %v343_v4  ;;  %v1840_v43 = vsub.f32 %v516_v61, %v544_v2  ;;  %v633_v61 = vand.u32 4294901760, %v632_v56 }
  0xdf   : > { %v517_v62 = vsel %vm501_vm7, %v493_v40, %v509_v35  ;;  %v1389_v40 = vpack.c.bf16 %v624_v5, %v617_v22 }
  0xe0   : > { %v547_v3 = vand.u32 4294901760, %v517_v62  ;;  %v645_v57 = vand.u32 4294901760, %v1840_v43  ;;  %v1356_v0 = vpack.c.bf16 %v640_v59, %v633_v61 }
  0xe2   : > { %v422_v6 = vpop.permute.xlu1 %421  ;;  %v1798_v7 = vpack.c.bf16 %v547_v3, %v544_v2  ;;  %v1835_v37 = vsub.f32 %v517_v62, %v547_v3  ;;  %v646_v62 = vsub.f32 %v1840_v43, %v645_v57 }
  0xe3   : > { %v435_v13 = vmul.f32 %v1736_v42, %v422_v6  ;;  %v442_v42 = vadd.f32 %v434_v19, %v390_v17 }
  0xe4   : > { %1348 = vmatpush3.bf16.msra.mxu1 %v1798_v7  ;;  %1384 = vmatpush3.bf16.msra.mxu0 %v1798_v7  ;;  %v652_v51 = vand.u32 4294901760, %v1835_v37  ;;  %v647_v4 = vand.u32 4294901760, %v646_v62 }
  0xe5   : > { %v443_v41 = vadd.f32 %v435_v13, %v391_v12  ;;  %1349 = vmatprep.subr.bf16.mxu1 %v1554_v18  ;;  %1385 = vmatprep.subr.bf16.mxu0 %v1554_v18 }
  0xe6   : > { %v653_v35 = vsub.f32 %v1835_v37, %v652_v51  ;;  %v1395_v13 = vpack.c.bf16 %v652_v51, %v645_v57 }
  0xe7   : > { %v495_v52 = vadd.f32 %v487_v14, %v443_v41  ;;  %v470_v10 = vpop.permute.xlu1 %469 }
  0xe8   : > { %v486_v20 = vmul.f32 %v1743_v48, %v470_v10  ;;  %v618_v48 = vsub.f32 %v1807_v16, %v617_v22  ;;  %v654_v2 = vand.u32 4294901760, %v653_v35  ;;  %v1368_v10 = vpack.c.bf16 %v1825_v23, %v1832_v11  ;;  %v1088_v11 = vpop.permute.xlu0 %1087 }
  0xe9   : > { %vm503_vm8 = vcmp.ge.f32.partialorder %v495_v52, 0.0  ;;  %v511_v24 = vmul.f32 0.01, %v495_v52 }
  0xea   : > { %v494_v25 = vadd.f32 %v486_v20, %v442_v42  ;;  %v619_v29 = vand.u32 4294901760, %v618_v48  ;;  %v1359_v12 = vpack.c.bf16 %v654_v2, %v647_v4 }
  0xeb   : > { %v519_v34 = vsel %vm503_vm8, %v495_v52, %v511_v24  ;;  %v1365_v52 = vpack.c.bf16 %v1818_v46, %v1807_v16 }
  0xec   : > { %vm502_vm9 = vcmp.ge.f32.partialorder %v494_v25, 0.0  ;;  %v510_v31 = vmul.f32 0.01, %v494_v25  ;;  %v553_v45 = vand.u32 4294901760, %v519_v34  ;;  %v1353_v58 = vpack.c.bf16 %v626_v55, %v619_v29 }
  0xee   : > { %v518_v30 = vsel %vm502_vm9, %v494_v25, %v510_v31  ;;  %v1850_v54 = vsub.f32 %v519_v34, %v553_v45  ;;  %v1093_v34 = vrot.slane %v1088_v11, %v334_v36 }
  0xef   : > { %v550_v44 = vand.u32 4294901760, %v518_v30 }
  0xf0   : > { %v666_v63 = vand.u32 4294901760, %v1850_v54 }
  0xf1   : > { %v1843_v47 = vpack.c.bf16 %v553_v45, %v550_v44  ;;  %v1845_v49 = vsub.f32 %v518_v30, %v550_v44 }
  0xf2   : > { %v667_v6 = vsub.f32 %v1850_v54, %v666_v63 }
  0xf3   : > { %1351 = vmatpush3.bf16.msra.mxu1 %v1843_v47  ;;  %1387 = vmatpush3.bf16.msra.mxu0 %v1843_v47  ;;  %v659_v60 = vand.u32 4294901760, %v1845_v49 }
  0xf4   : > { %1352 = vmatprep.subr.bf16.mxu1 %v1554_v18  ;;  %1388 = vmatprep.subr.bf16.mxu0 %v1554_v18  ;;  %v668_v17 = vand.u32 4294901760, %v667_v6 }
  0xf5   : > { %v660_v3 = vsub.f32 %v1845_v49, %v659_v60  ;;  %v1398_v41 = vpack.c.bf16 %v666_v63, %v659_v60 }
  0xf6   : > { %1243 = vmatmul.mubr.f32.vlgmr.msra.gmra.mrb[0].mxu1 %v608_v53  ;;  %1300 = vmatmul.mubr.f32.vlgmr.msra.gmra.mrb[0].mxu0 %v606_v26 }
  0xf7   : > { %1354 = vmatpush3.bf16.msra.mxu1 %v1353_v58  ;;  %1390 = vmatpush3.bf16.msra.mxu0 %v1389_v40  ;;  %v661_v14 = vand.u32 4294901760, %v660_v3 }
  0xf8   : > { %1355 = vmatprep.subr.bf16.mxu1 %v1554_v18  ;;  %1391 = vmatprep.subr.bf16.mxu0 %v1554_v18 }
  0xf9   : > { %1261 = vmatprep.mubr.msk.f32.mxu1 %vm1555_vm0, %v1556_v21  ;;  %1318 = vmatprep.mubr.msk.f32.mxu0 %vm1555_vm0, %v1556_v21  ;;  %v1362_v19 = vpack.c.bf16 %v668_v17, %v661_v14 }
  0xfb   : > { %1357 = vmatpush3.bf16.msra.mxu1 %v1356_v0  ;;  %1393 = vmatpush3.bf16.msra.mxu0 %v1392_v1 }
  0xfc   : > { %1358 = vmatprep.subr.bf16.mxu1 %v1554_v18  ;;  %1394 = vmatprep.subr.bf16.mxu0 %v1554_v18 }
  0xff   : > { %1360 = vmatpush3.bf16.msra.mxu1 %v1359_v12  ;;  %1396 = vmatpush3.bf16.msra.mxu0 %v1395_v13 }
 0x100   : > { %1361 = vmatprep.subr.bf16.mxu1 %v1554_v18  ;;  %1397 = vmatprep.subr.bf16.mxu0 %v1554_v18 }
 0x103   : > { %1363 = vmatpush3.bf16.msra.mxu1 %v1362_v19  ;;  %1399 = vmatpush3.bf16.msra.mxu0 %v1398_v41 }
 0x104   : > { %1364 = vmatprep.subr.bf16.mxu1 %v1554_v18  ;;  %1400 = vmatprep.subr.bf16.mxu0 %v1554_v18 }
 0x106   : > { %1262 = vmatmul.mubr.f32.vlgmr.msra.gmra.mrb[0].mxu1 %v1800_v9  ;;  %1319 = vmatmul.mubr.f32.vlgmr.msra.gmra.mrb[0].mxu0 %v1800_v9 }
 0x107   : > { %1366 = vmatpush3.bf16.msra.mxu1 %v1365_v52  ;;  %1402 = vmatpush3.bf16.msra.mxu0 %v1766_v15  ;;  %v1371_v15 = vpack.c.bf16 %v1835_v37, %v1840_v43 }
 0x108   : > { %1367 = vmatprep.subr.bf16.mxu1 %v1554_v18  ;;  %1403 = vmatprep.subr.bf16.mxu0 %v1554_v18 }
 0x109   : > { %1280 = vmatprep.mubr.msk.f32.mxu1 %vm1555_vm0, %v1556_v21  ;;  %1337 = vmatprep.mubr.msk.f32.mxu0 %vm1555_vm0, %v1556_v21  ;;  %v1374_v21 = vpack.c.bf16 %v1850_v54, %v1845_v49 }
 0x10b   : > { %1369 = vmatpush3.bf16.msra.mxu1 %v1368_v10  ;;  %1405 = vmatpush3.bf16.msra.mxu0 %v1778_v32  ;;  %v525_v32 = vpop.permute.xlu1 %524 }
 0x10c   : > { %1370 = vmatprep.subr.bf16.mxu1 %v1554_v18  ;;  %1406 = vmatprep.subr.bf16.mxu0 %v1554_v18 }
 0x10f   : > { %1372 = vmatpush3.bf16.msra.mxu1 %v1371_v15  ;;  %1408 = vmatpush3.bf16.msra.mxu0 %v1798_v7  ;;  %v1075_v23 = vpop.permute.xlu1 %1074 }
 0x110   : > { %1373 = vmatprep.subr.bf16.mxu1 %v1554_v18  ;;  %1409 = vmatprep.subr.bf16.mxu0 %v1554_v18 }
 0x113   : > { %1375 = vmatpush3.bf16.msra.mxu1 %v1374_v21  ;;  %1411 = vmatpush3.bf16.msra.mxu0 %v1843_v47 }
 0x116   : > { %1281 = vmatmul.mubr.f32.vlgmr.msra.gmra.mrb[0].mxu1 %v1821_v8  ;;  %1338 = vmatmul.mubr.f32.vlgmr.msra.gmra.mrb[0].mxu0 %v1800_v9 }
 0x1e9   : > { %v809_v16 = vpop.f32.mrb[0].mxu1  ;;  %v1064_v46 = vpop.f32.mrb[0].mxu0 }
 0x1ea   : > { %v1412_v42 = vadd.f32 %v809_v16, %v525_v32  ;;  %v1282_v7 = vpop.f32.mrb[1].mxu1  ;;  %v1339_v20 = vpop.f32.mrb[1].mxu0 }
 0x1ec   : > { %v1413_v22 = vadd.f32 %v1412_v42, %v1064_v46 }
 0x1ee   : > { %vm1068_vm10 = vcmp.ge.f32.partialorder %v1413_v22, 0.0  ;;  %v1069_v18 = vmul.f32 0.01, %v1413_v22 }
 0x1f0   : > { %v1070_v24 = vsel %vm1068_vm10, %v1413_v22, %v1069_v18 }
 0x1f1   : > { %v1077_v25 = vmul.f32 %v1075_v23, %v1070_v24 }
 0x1f3   : > { %v1078_v26 = vrot.slane %v1077_v25, 4 }
 0x1f5   : > { %v1079_v5 = vadd.f32 %v1078_v26, %v1077_v25 }
 0x1f7   : > { %v1080_v8 = vrot.slane %v1079_v5, 2 }
 0x1f9   : > { %v1081_v9 = vadd.f32 %v1080_v8, %v1079_v5 }
 0x1fb   : > { %v1082_v31 = vrot.slane %v1081_v9, 1 }
 0x1fd   : > { %v1083_v48 = vadd.f32 %v1082_v31, %v1081_v9 }
 0x1ff   : > { %v1094_v37 = vadd.f32 %v1093_v34, %v1083_v48 }
 0x201   : > { %1095 = vst [vmem:[%s270_s14] sm:$0x1] %v1094_v37 }
 0x202   : > { %1500 = shalt.err (!%p1497_p3)
}
 0x203   : > { %s1501_s23 = scalar_lea.hbm %s1908_s18, 16  ;;  %s1505_s30 = scalar_lea.hbm %s1957_s7, 64 }
 0x204   : > { %p1502_p4 = scmp.ne.s32.totalorder %s1908_s18, %s1501_s23  ;;  %p1506_p9 = scmp.lt.u32.totalorder %s1908_s18, %s1957_s7 }
 0x205   : > { %p1507_p10 = scmp.lt.u32.totalorder %s1505_s30, %s1501_s23  ;;  %p1509_p12 = scmp.lt.u32.totalorder %s1501_s23, %s1908_s18 }
 0x206   : > { %p1503_p7 = pnand %p1502_p4, %p1639_p5 }
 0x207   : > { %p1508_p11 = por %p1507_p10, %p1506_p9 }
 0x208   : > { %p1504_p8 = pneg %p1503_p7 }
 0x209   : > { %p1510_p13 = por %p1509_p12, %p1508_p11 }
 0x20b   : > { %p1511_p0 = pnand %p1510_p13, %p1504_p8 }
 0x20d   : > { %1514 = shalt.err (!%p1511_p0)
}
 0x20e   : > { %1422 = dma.vmem_to_hbm [thread:$0]  (%p1639_p5), %s1910_s15, 16, %s1908_s18, %s1097_s19  }
 0x20f PF: > { %p1428_p1 = scmp.ge.s32.totalorder %s1549_s29, 2  ;;  %s1121_s14 = sand.u32 1, %s1537_s26  }
 0x210   : > { %s1122_s16 = scalar_lea.sflag [#allocation4], %s1121_s14 }
 0x211   : > { %p1425_p2 = pnand %p1428_p1, %p1643_p6 }
 0x213   : > { %1532 = dma.done.wait (!%p1425_p2), %s1122_s16, 16  }
 0x214   : > { %1534 = vsyncadd (!%p1425_p2), %s1122_s16, 4294967280  ;;  %p19_p3 = scmp.ge.s32.totalorder %s1626_s8, 6   ;;  %s1960_s26 = smov %s1541_s27 }
 0x215   : > { %s1961_s27 = smov %s1545_s28  ;;  %s1962_s28 = smov %s1637_s11 }
 0x216   : > { %s1963_s29 = smov %s1626_s8  ;;  %21 = sbr.rel (!%p19_p3) target bundleno = 6 (0x6), region = 83 }
 0x21d   :  { %1126 = vsyncpa [#allocation4], 1 }
 0x21e   :  { %1128 = vsyncpa [#allocation4 + $0x1], 1 }

</bundles_post_ra>
